<compile_context>
chip_gen: v7x
topology: tpu7x:2x2x1
jax: 0.10.0
libtpu: 0.0.40
codegen_flags: <defaults>
</compile_context>

<pallas_src>
import functools

import jax
import jax.numpy as jnp
from jax.experimental import pallas as pl
from jax.experimental.pallas import tpu as pltpu

EMB_DIM = 64
PACKED_DIM = 2 * EMB_DIM          # two batch rows packed per 128-lane vector row
N_ITEMS = 19519
N_CUSTOMERS = 51527
BN_EPS = 1e-5

DEFAULT_TILE_B = 8192             # unpacked batch rows per grid step


def _cdiv(a, b):
    return (a + b - 1) // b


def _round_up(x, m):
    return _cdiv(x, m) * m


def _ncf_kernel(v_ref, w1_ref, w2_ref, w3_ref, vp_ref, o_ref):
    """One batch tile (two original batch rows packed per 128-lane row).

    v_ref : (T, 128)  packed pre-summed item+customer embeddings (bf16 or f32)
    w1_ref: (128,128) block-diagonal ResBlock-1 weight (same dtype as v)
    w2_ref: (128,128) block-diagonal ResBlock-2 weight
    w3_ref: (128, 2)  block-diagonal final 64->1 weight (f32)
    vp_ref: (8, 128)  packed f32 rows: [b1, s1, t1, b2, s2, t2, b3(bcast), 0]
    o_ref : (T, 2)    sigmoid output; element (r, c) = original batch row 2*r + c
    """
    b1, s1, t1 = vp_ref[0:1, :], vp_ref[1:2, :], vp_ref[2:3, :]
    b2, s2, t2 = vp_ref[3:4, :], vp_ref[4:5, :], vp_ref[5:6, :]
    b3 = vp_ref[6:7, 0:1]                                   # (1,1) broadcast scalar

    x_in = v_ref[...]                                       # matmul dtype (bf16/f32)
    x = x_in.astype(jnp.float32)                            # residual chain in f32

    # ResBlock 1: dense -> relu -> folded eval-mode BN -> (identity dropout) -> +x
    h = jnp.dot(x_in, w1_ref[...], preferred_element_type=jnp.float32) + b1
    h = jnp.maximum(h, 0.0)
    x = h * s1 + t1 + x

    # ResBlock 2
    h = jnp.dot(x.astype(w2_ref.dtype), w2_ref[...],
                preferred_element_type=jnp.float32) + b2
    h = jnp.maximum(h, 0.0)
    x = h * s2 + t2 + x

    # Final 64->1 layer on the MXU (idle slack): (T,128) @ (128,2) -> (T,2).
    logits = jnp.dot(x, w3_ref[...], preferred_element_type=jnp.float32) + b3
    o_ref[...] = jax.nn.sigmoid(logits)
    # TODO(synk): training-mode dropout / batch-stat BatchNorm not implemented
    # (eval-mode semantics only, matching the reference forward at inference).


@functools.partial(jax.jit, static_argnames=("tile_b", "use_bf16"))
def ncf_forward(customer, item, price, params, *, tile_b=DEFAULT_TILE_B, use_bf16=True):
    """customer, item: int32 (B,) index vectors. price is unused (matches torch forward)."""
    del price  # unused in the reference forward pass
    D, DP = EMB_DIM, PACKED_DIM
    cdt = jnp.bfloat16 if use_bf16 else jnp.float32

    # --- glue (plain JAX): embedding gather + sum; carried in bf16 on the perf path ---
    v = (params["emb_item"][item] + params["emb_customer"][customer]).astype(jnp.float32)
    B = v.shape[0]
    v = v.astype(cdt)

    # --- eval-mode BatchNorm folded into per-feature scale/shift ---
    def fold_bn(g, be, rm, rv):
        scale = g * jax.lax.rsqrt(rv + BN_EPS)
        shift = be - rm * scale
        return scale, shift

    s1, t1 = fold_bn(params["g1"], params["be1"], params["rm1"], params["rv1"])
    s2, t2 = fold_bn(params["g2"], params["be2"], params["rm2"], params["rv2"])

    def two(p):  # tile a (64,) per-feature vector across both packed halves -> (128,)
        p = p.astype(jnp.float32)
        return jnp.concatenate([p, p])

    vec_params = jnp.stack(
        [
            two(params["b1"]), two(s1), two(t1),
            two(params["b2"]), two(s2), two(t2),
            jnp.broadcast_to(params["b3"].astype(jnp.float32).reshape(-1)[0], (DP,)),
            jnp.zeros((DP,), jnp.float32),
        ],
        axis=0,
    )  # (8, 128): one tiny parameter DMA

    def block_diag2(w):  # (64,64) -> (128,128) with w on both diagonal blocks
        w = w.astype(jnp.float32)
        z = jnp.zeros((D, D), jnp.float32)
        return jnp.concatenate(
            [jnp.concatenate([w, z], axis=1), jnp.concatenate([z, w], axis=1)], axis=0)

    w1bd = block_diag2(params["w1"]).astype(cdt)
    w2bd = block_diag2(params["w2"]).astype(cdt)

    w3c = params["w3"].reshape(D, 1).astype(jnp.float32)
    zc = jnp.zeros((D, 1), jnp.float32)
    w3bd = jnp.concatenate(
        [jnp.concatenate([w3c, zc], axis=1), jnp.concatenate([zc, w3c], axis=1)],
        axis=0)  # (128, 2), f32

    # --- batch tiling: >=2 grid steps when possible (v7x megacore), minimal padding ---
    n_tiles = max(2, _cdiv(B, tile_b))
    tile = max(16, _round_up(_cdiv(B, n_tiles), 16))  # mult of 16 -> packed rows mult of 8
    n_tiles = _cdiv(B, tile)
    b_pad = n_tiles * tile
    if b_pad != B:
        v = jnp.pad(v, ((0, b_pad - B), (0, 0)))
    vp = v.reshape(b_pad // 2, DP)                    # two rows per 128-lane row (free reshape)
    tp = tile // 2                                    # packed rows per grid step

    out = pl.pallas_call(
        _ncf_kernel,
        out_shape=jax.ShapeDtypeStruct((b_pad // 2, 2), jnp.float32),
        grid_spec=pltpu.PrefetchScalarGridSpec(
            num_scalar_prefetch=0,
            grid=(n_tiles,),
            in_specs=[
                pl.BlockSpec((tp, DP), lambda i: (i, 0)),   # activations: tiled over batch
                pl.BlockSpec((DP, DP), lambda i: (0, 0)),   # w1 block-diag: fetched once
                pl.BlockSpec((DP, DP), lambda i: (0, 0)),   # w2 block-diag: fetched once
                pl.BlockSpec((DP, 2), lambda i: (0, 0)),    # w3 block-diag: fetched once
                pl.BlockSpec((8, DP), lambda i: (0, 0)),    # packed per-feature vectors
            ],
            out_specs=pl.BlockSpec((tp, 2), lambda i: (i, 0)),
        ),
        compiler_params=pltpu.CompilerParams(
            dimension_semantics=("parallel",),
        ),
    )(vp, w1bd, w2bd, w3bd, vec_params)

    # Row-major (b_pad/2, 2) is exactly original batch order -> (B, 1).
    return out.reshape(b_pad, 1)[:B]


def init_params(key):
    ks = jax.random.split(key, 12)
    D = EMB_DIM

    def linear_init(k, d_in, d_out):
        # PyTorch nn.Linear default: U(-1/sqrt(d_in), 1/sqrt(d_in))
        kw, kb = jax.random.split(k)
        lim = 1.0 / jnp.sqrt(d_in)
        w = jax.random.uniform(kw, (d_in, d_out), jnp.float32, -lim, lim)
        b = jax.random.uniform(kb, (d_out,), jnp.float32, -lim, lim)
        return w, b

    w1, b1 = linear_init(ks[0], D, D)
    w2, b2 = linear_init(ks[1], D, D)
    w3, b3 = linear_init(ks[2], D, 1)

    params = dict(
        # PyTorch nn.Embedding default init: N(0, 1)
        emb_item=jax.random.normal(ks[3], (N_ITEMS, D), jnp.float32),
        emb_customer=jax.random.normal(ks[4], (N_CUSTOMERS, D), jnp.float32),
        w1=w1, b1=b1,
        # Non-trivial BN running stats so the scale/shift folding is really tested.
        g1=1.0 + 0.1 * jax.random.normal(ks[5], (D,), jnp.float32),
        be1=0.1 * jax.random.normal(ks[6], (D,), jnp.float32),
        rm1=0.1 * jax.random.normal(ks[7], (D,), jnp.float32),
        rv1=1.0 + 0.1 * jax.random.uniform(ks[8], (D,), jnp.float32),
        w2=w2, b2=b2,
        g2=1.0 + 0.1 * jax.random.normal(ks[9], (D,), jnp.float32),
        be2=0.1 * jax.random.normal(ks[10], (D,), jnp.float32),
        rm2=jnp.zeros((D,), jnp.float32),
        rv2=1.0 + 0.1 * jax.random.uniform(ks[11], (D,), jnp.float32),
        w3=w3, b3=b3,
    )
    return params


def reference_forward(customer, item, price, params):
    """Pure-JAX f32 reference (matches PyTorch eval-mode forward)."""
    del price
    v = params["emb_item"][item] + params["emb_customer"][customer]

    def block(x, w, b, g, be, rm, rv):
        h = jnp.maximum(x @ w + b, 0.0)
        h = (h - rm) / jnp.sqrt(rv + BN_EPS) * g + be
        return h + x

    x = block(v, params["w1"], params["b1"], params["g1"], params["be1"],
              params["rm1"], params["rv1"])
    x = block(x, params["w2"], params["b2"], params["g2"], params["be2"],
              params["rm2"], params["rv2"])
    return jax.nn.sigmoid(x @ params["w3"] + params["b3"])


def reference_forward_bf16(customer, item, price, params):
    """Reference mirroring the kernel's bf16 operand rounding (f32 accumulation)."""
    del price
    f32, bf = jnp.float32, jnp.bfloat16
    v_bf = (params["emb_item"][item] + params["emb_customer"][customer]).astype(f32).astype(bf)
    w1 = params["w1"].astype(bf).astype(f32)
    w2 = params["w2"].astype(bf).astype(f32)

    def block(x_mm, x_res, w, b, g, be, rm, rv):
        h = jnp.maximum(x_mm.astype(f32) @ w + b, 0.0)
        h = (h - rm) / jnp.sqrt(rv + BN_EPS) * g + be
        return h + x_res

    x0 = v_bf.astype(f32)
    x1 = block(v_bf, x0, w1, params["b1"], params["g1"], params["be1"],
               params["rm1"], params["rv1"])
    x2 = block(x1.astype(bf), x1, w2, params["b2"], params["g2"], params["be2"],
               params["rm2"], params["rv2"])
    return jax.nn.sigmoid(x2 @ params["w3"] + params["b3"])


if __name__ == "__main__":
    key = jax.random.PRNGKey(0)
    params = init_params(key)

    def make_inputs(B):
        kk = jax.random.fold_in(key, B)
        ck, ik, prk = jax.random.split(kk, 3)
        customer = jax.random.randint(ck, (B,), 0, N_CUSTOMERS, dtype=jnp.int32)
        item = jax.random.randint(ik, (B,), 0, N_ITEMS, dtype=jnp.int32)
        price = jax.random.uniform(prk, (B,), jnp.float32)  # unused, matches torch signature
        return customer, item, price

    # Strict f32 path: tight check of kernel logic (BN fold, lane packing, residuals).
    for B in (8, 37):
        c, i, p = make_inputs(B)
        out = jax.block_until_ready(ncf_forward(c, i, p, params, use_bf16=False))
        ref = reference_forward(c, i, p, params)
        assert out.shape == (B, 1), out.shape
        assert jnp.allclose(out, ref, atol=1e-5, rtol=1e-4), ("f32", B)

    # Default bf16 path (perf config): compare against a reference that mirrors the
    # bf16 operand rounding, plus a loose sanity check against the pure-f32 reference.
    for B in (37, 4097):
        c, i, p = make_inputs(B)
        out = jax.block_until_ready(ncf_forward(c, i, p, params))
        ref_bf = reference_forward_bf16(c, i, p, params)
        ref32 = reference_forward(c, i, p, params)
        assert out.shape == (B, 1), out.shape
        assert jnp.allclose(out, ref_bf, atol=1e-4, rtol=2e-3), ("bf16", B)
        assert jnp.allclose(out, ref32, atol=5e-2), ("bf16-vs-f32", B)

    print("KERNEL_OK")
</pallas_src>

<mosaic_0001>
module attributes {stable_mosaic.version = 11 : i64} {
  func.func @_ncf_kernel(%arg0: i32, %arg1: memref<8x128xf32, #tpu.memory_space<vmem>>, %arg2: memref<128x128xf32, #tpu.memory_space<vmem>>, %arg3: memref<128x128xf32, #tpu.memory_space<vmem>>, %arg4: memref<128x2xf32, #tpu.memory_space<vmem>>, %arg5: memref<8x128xf32, #tpu.memory_space<vmem>>, %arg6: memref<8x2xf32, #tpu.memory_space<vmem>>) attributes {dimension_semantics = [#tpu.dimension_semantics<parallel>], iteration_bounds = array<i64: 1>, scalar_prefetch = 0 : i64, scratch_operands = 0 : i64, tpu.core_type = #tpu.core_type<tc>, window_params = [{transform_indices = @transform_0, window_bounds = array<i64: 8, 128>}, {pipeline_mode = #tpu.pipeline_mode<synchronous>, transform_indices = @transform_1, window_bounds = array<i64: 128, 128>}, {pipeline_mode = #tpu.pipeline_mode<synchronous>, transform_indices = @transform_2, window_bounds = array<i64: 128, 128>}, {pipeline_mode = #tpu.pipeline_mode<synchronous>, transform_indices = @transform_3, window_bounds = array<i64: 128, 2>}, {pipeline_mode = #tpu.pipeline_mode<synchronous>, transform_indices = @transform_4, window_bounds = array<i64: 8, 128>}, {transform_indices = @transform_5, window_bounds = array<i64: 8, 2>}]} {
    %c0 = arith.constant 0 : index
    %c0_0 = arith.constant 0 : index
    %0 = vector.load %arg5[%c0, %c0_0] : memref<8x128xf32, #tpu.memory_space<vmem>>, vector<1x128xf32>
    %c1 = arith.constant 1 : index
    %c0_1 = arith.constant 0 : index
    %1 = vector.load %arg5[%c1, %c0_1] : memref<8x128xf32, #tpu.memory_space<vmem>>, vector<1x128xf32>
    %c2 = arith.constant 2 : index
    %c0_2 = arith.constant 0 : index
    %2 = vector.load %arg5[%c2, %c0_2] : memref<8x128xf32, #tpu.memory_space<vmem>>, vector<1x128xf32>
    %c3 = arith.constant 3 : index
    %c0_3 = arith.constant 0 : index
    %3 = vector.load %arg5[%c3, %c0_3] : memref<8x128xf32, #tpu.memory_space<vmem>>, vector<1x128xf32>
    %c4 = arith.constant 4 : index
    %c0_4 = arith.constant 0 : index
    %4 = vector.load %arg5[%c4, %c0_4] : memref<8x128xf32, #tpu.memory_space<vmem>>, vector<1x128xf32>
    %c5 = arith.constant 5 : index
    %c0_5 = arith.constant 0 : index
    %5 = vector.load %arg5[%c5, %c0_5] : memref<8x128xf32, #tpu.memory_space<vmem>>, vector<1x128xf32>
    %c6 = arith.constant 6 : index
    %c0_6 = arith.constant 0 : index
    %6 = vector.load %arg5[%c6, %c0_6] : memref<8x128xf32, #tpu.memory_space<vmem>>, vector<1x1xf32>
    %c0_7 = arith.constant 0 : index
    %c0_8 = arith.constant 0 : index
    %7 = vector.load %arg1[%c0_7, %c0_8] : memref<8x128xf32, #tpu.memory_space<vmem>>, vector<8x128xf32>
    %c0_9 = arith.constant 0 : index
    %c0_10 = arith.constant 0 : index
    %8 = vector.load %arg2[%c0_9, %c0_10] : memref<128x128xf32, #tpu.memory_space<vmem>>, vector<128x128xf32>
    %cst = arith.constant dense<0.000000e+00> : vector<8x128xf32>
    %9 = tpu.matmul %7, %8, %cst {dimension_numbers = #tpu.dot_dimension_numbers<[1], [0], [0], [1], [0, 0, 1, 1], [], []>} : vector<8x128xf32>, vector<128x128xf32>, vector<8x128xf32> -> vector<8x128xf32>
    %10 = vector.broadcast %0 : vector<1x128xf32> to vector<8x128xf32>
    %11 = arith.addf %9, %10 : vector<8x128xf32>
    %cst_11 = arith.constant 0.000000e+00 : f32
    %12 = vector.broadcast %cst_11 : f32 to vector<8x128xf32>
    %13 = arith.maximumf %11, %12 : vector<8x128xf32>
    %14 = vector.broadcast %1 : vector<1x128xf32> to vector<8x128xf32>
    %15 = arith.mulf %13, %14 : vector<8x128xf32>
    %16 = vector.broadcast %2 : vector<1x128xf32> to vector<8x128xf32>
    %17 = arith.addf %15, %16 : vector<8x128xf32>
    %18 = arith.addf %17, %7 : vector<8x128xf32>
    %c0_12 = arith.constant 0 : index
    %c0_13 = arith.constant 0 : index
    %19 = vector.load %arg3[%c0_12, %c0_13] : memref<128x128xf32, #tpu.memory_space<vmem>>, vector<128x128xf32>
    %cst_14 = arith.constant dense<0.000000e+00> : vector<8x128xf32>
    %20 = tpu.matmul %18, %19, %cst_14 {dimension_numbers = #tpu.dot_dimension_numbers<[1], [0], [0], [1], [0, 0, 1, 1], [], []>} : vector<8x128xf32>, vector<128x128xf32>, vector<8x128xf32> -> vector<8x128xf32>
    %21 = vector.broadcast %3 : vector<1x128xf32> to vector<8x128xf32>
    %22 = arith.addf %20, %21 : vector<8x128xf32>
    %cst_15 = arith.constant 0.000000e+00 : f32
    %23 = vector.broadcast %cst_15 : f32 to vector<8x128xf32>
    %24 = arith.maximumf %22, %23 : vector<8x128xf32>
    %25 = vector.broadcast %4 : vector<1x128xf32> to vector<8x128xf32>
    %26 = arith.mulf %24, %25 : vector<8x128xf32>
    %27 = vector.broadcast %5 : vector<1x128xf32> to vector<8x128xf32>
    %28 = arith.addf %26, %27 : vector<8x128xf32>
    %29 = arith.addf %28, %18 : vector<8x128xf32>
    %c0_16 = arith.constant 0 : index
    %c0_17 = arith.constant 0 : index
    %30 = vector.load %arg4[%c0_16, %c0_17] : memref<128x2xf32, #tpu.memory_space<vmem>>, vector<128x2xf32>
    %cst_18 = arith.constant dense<0.000000e+00> : vector<8x2xf32>
    %31 = tpu.matmul %29, %30, %cst_18 {dimension_numbers = #tpu.dot_dimension_numbers<[1], [0], [0], [1], [0, 0, 1, 1], [], []>} : vector<8x128xf32>, vector<128x2xf32>, vector<8x2xf32> -> vector<8x2xf32>
    %32 = vector.broadcast %6 : vector<1x1xf32> to vector<8x2xf32>
    %33 = arith.addf %31, %32 : vector<8x2xf32>
    %34 = arith.negf %33 : vector<8x2xf32>
    %35 = math.exp %34 : vector<8x2xf32>
    %cst_19 = arith.constant 1.000000e+00 : f32
    %36 = vector.broadcast %cst_19 : f32 to vector<8x2xf32>
    %37 = arith.addf %36, %35 : vector<8x2xf32>
    %38 = arith.divf %36, %37 : vector<8x2xf32>
    %c0_20 = arith.constant 0 : index
    %c0_21 = arith.constant 0 : index
    %39 = vector.load %arg6[%c0_20, %c0_21] : memref<8x2xf32, #tpu.memory_space<vmem>>, vector<8x2xf32>
    tpu.vector_store %arg6[%c0_20, %c0_21], %38 {strides = array<i32>} : memref<8x2xf32, #tpu.memory_space<vmem>>, vector<8x2xf32>,
    return
  }
  func.func @transform_0(%arg0: i32) -> (i32, i32) {
    %c0_i32 = arith.constant 0 : i32
    %c0_i32_0 = arith.constant 0 : i32
    return %arg0, %c0_i32 : i32, i32
  }
  func.func @transform_1(%arg0: i32) -> (i32, i32) {
    %c0_i32 = arith.constant 0 : i32
    %c0_i32_0 = arith.constant 0 : i32
    %c0_i32_1 = arith.constant 0 : i32
    return %c0_i32, %c0_i32_0 : i32, i32
  }
  func.func @transform_2(%arg0: i32) -> (i32, i32) {
    %c0_i32 = arith.constant 0 : i32
    %c0_i32_0 = arith.constant 0 : i32
    %c0_i32_1 = arith.constant 0 : i32
    return %c0_i32, %c0_i32_0 : i32, i32
  }
  func.func @transform_3(%arg0: i32) -> (i32, i32) {
    %c0_i32 = arith.constant 0 : i32
    %c0_i32_0 = arith.constant 0 : i32
    %c0_i32_1 = arith.constant 0 : i32
    return %c0_i32, %c0_i32_0 : i32, i32
  }
  func.func @transform_4(%arg0: i32) -> (i32, i32) {
    %c0_i32 = arith.constant 0 : i32
    %c0_i32_0 = arith.constant 0 : i32
    %c0_i32_1 = arith.constant 0 : i32
    return %c0_i32, %c0_i32_0 : i32, i32
  }
  func.func @transform_5(%arg0: i32) -> (i32, i32) {
    %c0_i32 = arith.constant 0 : i32
    %c0_i32_0 = arith.constant 0 : i32
    return %arg0, %c0_i32 : i32, i32
  }
}

</mosaic_0001>

<bundles_post_ra>
// kernel: ncf_forward.1
= control target key start
LH: loop header
LB: loop body
LE: loop exit
PB: predicated region body
PF: predicated region fallthrough
CT: control target
= control target key end

     0   :  { %v578_v0 = vmov 0.0|0.0   ;;  %vm579_vm0 = vmmov 0   ;;  %v580_v4 = vmov 0.0   ;;  %vm328_vm1 = vcmask 15360   ;;  %s812_s1 = inlined_call_operand.vmem [shape: f32[128,128], index: 1, kind: input, shape index: {}]   ;;  %s813_s2 = inlined_call_operand.vmem [shape: f32[128,128], index: 2, kind: input, shape index: {}]   ;;  %s814_s0 = inlined_call_operand.vmem [shape: f32[8,128], index: 0, kind: input, shape index: {}]   ;;  %s815_s3 = inlined_call_operand.vmem [shape: f32[128,2], index: 3, kind: input, shape index: {}]   ;;  %s816_s4 = inlined_call_operand.vmem [shape: f32[8,128], index: 4, kind: input, shape index: {}]   ;;  %s817_s5 = inlined_call_operand.vmem [shape: f32[8,2], index: 5, kind: output, shape index: {}]  }
   0x1   :  { %497 = vmatprep.subr.bf16.mxu0 %v578_v0  ;;  %v28_v1 = vld [vmem:[%s812_s1] sm:$0xff]  ;;  %v29_v2 = vld [vmem:[%s812_s1 + $0x8] sm:$0xff]  ;;  %v30_v3 = vld [vmem:[%s812_s1 + $0x10] sm:$0xff]  ;;  %424 = vmatprep.mubr.msk.f32.mxu0 %vm579_vm0, %v580_v4 }
   0x2   :  { %v498_v5 = vpack.c.bf16 %v29_v2, %v28_v1  ;;  %v31_v6 = vld [vmem:[%s812_s1 + $0x18] sm:$0xff]  ;;  %521 = vmatprep.subr.bf16.mxu1 %v578_v0  ;;  %459 = vmatprep.mubr.msk.f32.mxu1 %vm579_vm0, %v580_v4  ;;  %v32_v8 = vld [vmem:[%s812_s1 + $0x20] sm:$0xff]  ;;  %v33_v9 = vld [vmem:[%s812_s1 + $0x28] sm:$0xff] }
   0x3   :  { %v501_v7 = vpack.c.bf16 %v31_v6, %v30_v3  ;;  %v130_v10 = vld [vmem:[%s813_s2] sm:$0xff]  ;;  %v131_v11 = vld [vmem:[%s813_s2 + $0x8] sm:$0xff]  ;;  %v132_v12 = vld [vmem:[%s813_s2 + $0x10] sm:$0xff]  ;;  %v504_v14 = vpack.c.bf16 %v33_v9, %v32_v8 }
   0x4   :  { %499 = vmatpush3.bf16.msra.mxu0 %v498_v5  ;;  %v133_v13 = vld [vmem:[%s813_s2 + $0x18] sm:$0xff]  ;;  %v522_v15 = vpack.c.bf16 %v131_v11, %v130_v10  ;;  %v34_v16 = vld [vmem:[%s812_s1 + $0x30] sm:$0xff]  ;;  %v134_v19 = vld [vmem:[%s813_s2 + $0x20] sm:$0xff] }
   0x5   :  { %500 = vmatprep.subr.bf16.mxu0 %v578_v0  ;;  %v35_v17 = vld [vmem:[%s812_s1 + $0x38] sm:$0xff]  ;;  %v525_v18 = vpack.c.bf16 %v133_v13, %v132_v12  ;;  %v135_v20 = vld [vmem:[%s813_s2 + $0x28] sm:$0xff]  ;;  %v36_v22 = vld [vmem:[%s812_s1 + $0x40] sm:$0xff] }
   0x6   :  { %523 = vmatpush3.bf16.msra.mxu1 %v522_v15  ;;  %v507_v21 = vpack.c.bf16 %v35_v17, %v34_v16  ;;  %v37_v23 = vld [vmem:[%s812_s1 + $0x48] sm:$0xff]  ;;  %v528_v24 = vpack.c.bf16 %v135_v20, %v134_v19  ;;  %v136_v25 = vld [vmem:[%s813_s2 + $0x30] sm:$0xff]  ;;  %v137_v26 = vld [vmem:[%s813_s2 + $0x38] sm:$0xff] }
   0x7   :  { %524 = vmatprep.subr.bf16.mxu1 %v578_v0  ;;  %v510_v27 = vpack.c.bf16 %v37_v23, %v36_v22  ;;  %v38_v28 = vld [vmem:[%s812_s1 + $0x50] sm:$0xff]  ;;  %v39_v29 = vld [vmem:[%s812_s1 + $0x58] sm:$0xff]  ;;  %v531_v30 = vpack.c.bf16 %v137_v26, %v136_v25  ;;  %v138_v31 = vld [vmem:[%s813_s2 + $0x40] sm:$0xff] }
   0x8   :  { %502 = vmatpush3.bf16.msra.mxu0 %v501_v7  ;;  %v139_v32 = vld [vmem:[%s813_s2 + $0x48] sm:$0xff]  ;;  %v513_v33 = vpack.c.bf16 %v39_v29, %v38_v28  ;;  %v40_v34 = vld [vmem:[%s812_s1 + $0x60] sm:$0xff]  ;;  %v42_v38 = vld [vmem:[%s812_s1 + $0x70] sm:$0xff] }
   0x9   :  { %503 = vmatprep.subr.bf16.mxu0 %v578_v0  ;;  %v41_v35 = vld [vmem:[%s812_s1 + $0x68] sm:$0xff]  ;;  %v534_v36 = vpack.c.bf16 %v139_v32, %v138_v31  ;;  %v43_v39 = vld [vmem:[%s812_s1 + $0x78] sm:$0xff]  ;;  %v27_v41 = vld [vmem:[%s814_s0] sm:$0xff] }
   0xa   :  { %526 = vmatpush3.bf16.msra.mxu1 %v525_v18  ;;  %v516_v37 = vpack.c.bf16 %v41_v35, %v40_v34  ;;  %v519_v40 = vpack.c.bf16 %v43_v39, %v42_v38  ;;  %v140_v42 = vld [vmem:[%s813_s2 + $0x50] sm:$0xff]  ;;  %v141_v43 = vld [vmem:[%s813_s2 + $0x58] sm:$0xff]  ;;  %v142_v45 = vld [vmem:[%s813_s2 + $0x60] sm:$0xff] }
   0xb   :  { %527 = vmatprep.subr.bf16.mxu1 %v578_v0  ;;  %v537_v44 = vpack.c.bf16 %v141_v43, %v140_v42  ;;  %v143_v46 = vld [vmem:[%s813_s2 + $0x68] sm:$0xff]  ;;  %v144_v48 = vld [vmem:[%s813_s2 + $0x70] sm:$0xff]  ;;  %v145_v49 = vld [vmem:[%s813_s2 + $0x78] sm:$0xff] }
   0xc   :  { %505 = vmatpush3.bf16.msra.mxu0 %v504_v14  ;;  %v540_v47 = vpack.c.bf16 %v143_v46, %v142_v45  ;;  %v543_v50 = vpack.c.bf16 %v145_v49, %v144_v48  ;;  %v232_v51 = vld [vmem:[%s815_s3] sm:$0xff]  ;;  %v233_v52 = vld [vmem:[%s815_s3 + $0x8] sm:$0xff]  ;;  %v234_v53 = vld [vmem:[%s815_s3 + $0x10] sm:$0xff] }
   0xd   :  { %506 = vmatprep.subr.bf16.mxu0 %v578_v0  ;;  %v546_v54 = vpack.c.bf16 %v233_v52, %v232_v51  ;;  %v235_v55 = vld [vmem:[%s815_s3 + $0x18] sm:$0xff]  ;;  %v236_v57 = vld [vmem:[%s815_s3 + $0x20] sm:$0xff]  ;;  %v237_v58 = vld [vmem:[%s815_s3 + $0x28] sm:$0xff] }
   0xe   :  { %529 = vmatpush3.bf16.msra.mxu1 %v528_v24  ;;  %v549_v56 = vpack.c.bf16 %v235_v55, %v234_v53  ;;  %v552_v59 = vpack.c.bf16 %v237_v58, %v236_v57  ;;  %v238_v60 = vld [vmem:[%s815_s3 + $0x30] sm:$0xff]  ;;  %v239_v61 = vld [vmem:[%s815_s3 + $0x38] sm:$0xff]  ;;  %v240_v63 = vld [vmem:[%s815_s3 + $0x40] sm:$0xff] }
   0xf   :  { %530 = vmatprep.subr.bf16.mxu1 %v578_v0  ;;  %v555_v62 = vpack.c.bf16 %v239_v61, %v238_v60  ;;  %v241_v1 = vld [vmem:[%s815_s3 + $0x48] sm:$0xff]  ;;  %v334_v3 = vld [vmem:[%s816_s4] ss:$0 sm:$0xff]  ;;  %v335_v7 = vld [vmem:[%s816_s4 + $0x1] ss:$0 sm:$0xff] }
  0x10   :  { %508 = vmatpush3.bf16.msra.mxu0 %v507_v21  ;;  %v558_v2 = vpack.c.bf16 %v241_v1, %v240_v63  ;;  %v336_v9 = vld [vmem:[%s816_s4 + $0x2] ss:$0 sm:$0xff]  ;;  %v242_v13 = vld [vmem:[%s815_s3 + $0x50] sm:$0xff]  ;;  %v243_v14 = vld [vmem:[%s815_s3 + $0x58] sm:$0xff] }
  0x11   :  { %509 = vmatprep.subr.bf16.mxu0 %v578_v0  ;;  %v561_v15 = vpack.c.bf16 %v243_v14, %v242_v13  ;;  %v244_v16 = vld [vmem:[%s815_s3 + $0x60] sm:$0xff]  ;;  %v245_v17 = vld [vmem:[%s815_s3 + $0x68] sm:$0xff]  ;;  %v246_v19 = vld [vmem:[%s815_s3 + $0x70] sm:$0xff] }
  0x12   :  { %532 = vmatpush3.bf16.msra.mxu1 %v531_v30  ;;  %v564_v18 = vpack.c.bf16 %v245_v17, %v244_v16  ;;  %v247_v20 = vld [vmem:[%s815_s3 + $0x78] sm:$0xff]  ;;  %v26_v22 = vld [vmem:[%s816_s4 + $0x6] sm:$0x1]  ;;  %v337_v23 = vld [vmem:[%s816_s4 + $0x3] ss:$0 sm:$0xff] }
  0x13   :  { %533 = vmatprep.subr.bf16.mxu1 %v578_v0  ;;  %v567_v21 = vpack.c.bf16 %v247_v20, %v246_v19  ;;  %569 = vpush %v26_v22  ;;  %v338_v26 = vld [vmem:[%s816_s4 + $0x4] ss:$0 sm:$0xff]  ;;  %v339_v28 = vld [vmem:[%s816_s4 + $0x5] ss:$0 sm:$0xff] }
  0x14   :  { %511 = vmatpush3.bf16.msra.mxu0 %v510_v27 }
  0x15   :  { %512 = vmatprep.subr.bf16.mxu0 %v578_v0 }
  0x16   :  { %535 = vmatpush3.bf16.msra.mxu1 %v534_v36 }
  0x17   :  { %536 = vmatprep.subr.bf16.mxu1 %v578_v0 }
  0x18   :  { %514 = vmatpush3.bf16.msra.mxu0 %v513_v33 }
  0x19   :  { %515 = vmatprep.subr.bf16.mxu0 %v578_v0 }
  0x1a   :  { %538 = vmatpush3.bf16.msra.mxu1 %v537_v44 }
  0x1b   :  { %539 = vmatprep.subr.bf16.mxu1 %v578_v0 }
  0x1c   :  { %517 = vmatpush3.bf16.msra.mxu0 %v516_v37 }
  0x1d   :  { %518 = vmatprep.subr.bf16.mxu0 %v578_v0 }
  0x1e   :  { %541 = vmatpush3.bf16.msra.mxu1 %v540_v47 }
  0x1f   :  { %542 = vmatprep.subr.bf16.mxu1 %v578_v0 }
  0x20   :  { %520 = vmatpush3.bf16.msra.mxu0 %v519_v40 }
  0x21   :  { %545 = vmatprep.subr.bf16.mxu0 %v578_v0 }
  0x22   :  { %544 = vmatpush3.bf16.msra.mxu1 %v543_v50 }
  0x23   :  { %425 = vmatmul.mubr.f32.vlgmr.msra.gmra.mrb[0].mxu0 %v27_v41 }
  0x24   :  { %494 = vmatprep.mubr.msk.f32.mxu0 %vm579_vm0, %v580_v4  ;;  %547 = vmatpush3.bf16.msra.mxu0 %v546_v54 }
  0x25   :  { %548 = vmatprep.subr.bf16.mxu0 %v578_v0 }
  0x28   :  { %550 = vmatpush3.bf16.msra.mxu0 %v549_v56 }
  0x29   :  { %551 = vmatprep.subr.bf16.mxu0 %v578_v0 }
  0x2c   :  { %553 = vmatpush3.bf16.msra.mxu0 %v552_v59 }
  0x2d   :  { %554 = vmatprep.subr.bf16.mxu0 %v578_v0 }
  0x30   :  { %556 = vmatpush3.bf16.msra.mxu0 %v555_v62 }
  0x31   :  { %557 = vmatprep.subr.bf16.mxu0 %v578_v0 }
  0x34   :  { %559 = vmatpush3.bf16.msra.mxu0 %v558_v2 }
  0x35   :  { %560 = vmatprep.subr.bf16.mxu0 %v578_v0 }
  0x38   :  { %562 = vmatpush3.bf16.msra.mxu0 %v561_v15 }
  0x39   :  { %563 = vmatprep.subr.bf16.mxu0 %v578_v0 }
  0x3c   :  { %565 = vmatpush3.bf16.msra.mxu0 %v564_v18 }
  0x3d   :  { %566 = vmatprep.subr.bf16.mxu0 %v578_v0 }
  0x40   :  { %568 = vmatpush3.bf16.msra.mxu0 %v567_v21 }
  0x44   :  { %s570_s1 = spop %569 }
  0x45   :  { %v250_v32 = vstv %s570_s1 }
  0xf6   :  { %v114_v4 = vpop.f32.mrb[0].mxu0 }
  0xf7   :  { %v115_v5 = vadd.f32 %v334_v3, %v114_v4  ;;  %v426_v6 = vpop.f32.mrb[1].mxu0 }
  0xf9   :  { %v118_v8 = vmax.f32 %v115_v5, 0.0 }
  0xfb   :  { %v123_v10 = vmul.f32 %v335_v7, %v118_v8 }
  0xfd   :  { %v128_v11 = vadd.f32 %v336_v9, %v123_v10 }
  0xff   :  { %v129_v12 = vadd.f32 %v128_v11, %v27_v41 }
 0x101   :  { %460 = vmatmul.mubr.f32.vlgmr.msra.gmra.mrb[0].mxu1 %v129_v12 }
 0x1d4   :  { %v216_v0 = vpop.f32.mrb[0].mxu1 }
 0x1d5   :  { %v217_v24 = vadd.f32 %v337_v23, %v216_v0  ;;  %v461_v25 = vpop.f32.mrb[1].mxu1 }
 0x1d7   :  { %v220_v27 = vmax.f32 %v217_v24, 0.0 }
 0x1d9   :  { %v225_v29 = vmul.f32 %v338_v26, %v220_v27 }
 0x1db   :  { %v230_v30 = vadd.f32 %v339_v28, %v225_v29 }
 0x1dd   :  { %v231_v31 = vadd.f32 %v230_v30, %v129_v12 }
 0x1df   :  { %495 = vmatmul.mubr.f32.vlgmr.msra.gmra.mrb[2].mxu0 %v231_v31 }
 0x2b2   :  { %v318_v33 = vpop.f32.mrb[2].mxu0 }
 0x2b3   :  { %v319_v34 = vadd.f32 %v318_v33, %v250_v32  ;;  %v496_v35 = vpop.f32.mrb[3].mxu0 }
 0x2b5   :  { %v340_v36 = vmul.f32 -1.442695, %v319_v34 }
 0x2b7   :  { %574 = vpow2.f32 %v340_v36 }
 0x2c1   :  { %v575_v37 = vpop.eup %574 }
 0x2c2   :  { %v325_v38 = vadd.f32 1.0, %v575_v37 }
 0x2c4   :  { %576 = vrcp.f32 %v325_v38 }
 0x2ce   :  { %v577_v39 = vpop.eup %576 }
 0x2cf   :  { %329 = vst.msk [vmem:[%s817_s5] sm:$0xff] %vm328_vm1, %v577_v39 }

</bundles_post_ra>
